<compile_context>
chip_gen: v7x
topology: tpu7x:2x2x1
jax: 0.10.0
libtpu: 0.0.40
codegen_flags: <defaults>
</compile_context>

<pallas_src>
import jax
import jax.numpy as jnp
from jax import lax
from jax.experimental import pallas as pl
from jax.experimental.pallas import tpu as pltpu


def _ntm_read_head_step_kernel(x_ref, params_ref, mem_ref, w0_ref, out_ref, w_state):
    """One NTMReadHead.forward step for one batch row; grid = (B, T)."""
    t = pl.program_id(1)

    # At the first timestep of this batch row, load the externally supplied
    # previous weights into the carried VMEM state.
    @pl.when(t == 0)
    def _():
        w_state[...] = w0_ref[...]                    # (1, 1, N)

    mem = mem_ref[...]                                # (1, N, M)  resident across t
    emb = x_ref[0]                                    # (1, C)
    params = params_ref[...]                          # (C+1, OUT) resident across grid

    _, N, M = mem.shape
    C = params.shape[0] - 1
    P = out_ref.shape[2]

    w_fc = params[:C, :]                              # (C, OUT) = fc_read.weight^T
    bias = params[C:C + 1, :]                         # (1, OUT)

    # fc_read on the MXU
    o = jnp.dot(emb, w_fc, preferred_element_type=jnp.float32) + bias   # (1, OUT)

    # --- head activations: ONE softplus pass over the whole 6-wide tail slab ---
    tail = o[:, M:]                                   # (1, 6) = [beta, g, s0, s1, s2, gamma]
    sp = jnp.maximum(tail, 0.0) + jnp.log1p(jnp.exp(-jnp.abs(tail)))    # stable softplus
    beta = sp[:, 0:1][:, None, :]                     # (1, 1, 1)
    g = (0.5 * (jnp.tanh(0.5 * tail[:, 1:2]) + 1.0))[:, None, :]        # stable sigmoid
    gamma = (1.0 + sp[:, 5:6])[:, None, :]            # (1, 1, 1)

    # 3-tap shift softmax with explicit max / adds (no lane reduce over 3 elems)
    a0, a1, a2 = sp[:, 2:3], sp[:, 3:4], sp[:, 4:5]
    smax = jnp.maximum(jnp.maximum(a0, a1), a2)
    e0, e1, e2 = jnp.exp(a0 - smax), jnp.exp(a1 - smax), jnp.exp(a2 - smax)
    inv_es = pl.reciprocal(e0 + e1 + e2, approx=True)
    s0 = (e0 * inv_es)[:, None, :]
    s1 = (e1 * inv_es)[:, None, :]
    s2 = (e2 * inv_es)[:, None, :]

    k3 = o[:, :M][:, None, :]                         # (1, 1, M)

    # --- content addressing: softmax(beta * cosine(mem, k)) ------------------
    # VPU multiply + lane reduce (tiny per-step MXU matvecs are pure latency).
    # Note: reference adds +1e-16 to mem/k; with the 1e-8 norm clamp below this
    # only differs when a memory row is exactly zero.
    sim = jnp.sum(mem * k3, axis=-1)[:, None, :]          # (1, 1, N)
    mem_sq = jnp.sum(mem * mem, axis=-1)[:, None, :]      # (1, 1, N)
    k_sq = jnp.sum(k3 * k3, axis=-1, keepdims=True)       # (1, 1, 1)
    inv_norm = lax.rsqrt(jnp.maximum(mem_sq * k_sq, 1e-16))   # == 1/max(|m||k|, 1e-8)
    z = beta * sim * inv_norm
    z = z - jnp.max(z, axis=-1, keepdims=True)
    ez = jnp.exp(z)
    wc = ez * pl.reciprocal(jnp.sum(ez, axis=-1, keepdims=True), approx=True)

    # --- interpolation with the carried previous weights ---------------------
    w_prev = w_state[...]                             # (1, 1, N)
    wg = g * wc + (1.0 - g) * w_prev

    # --- circular convolution with the 3-tap shift kernel --------------------
    # c[i] = s0 * wg[(i-1) % N] + s1 * wg[i] + s2 * wg[(i+1) % N]
    if N % 128 == 0:
        left = pltpu.roll(wg, shift=1, axis=2)
        right = pltpu.roll(wg, shift=-1, axis=2)
    else:
        left = jnp.concatenate([wg[:, :, -1:], wg[:, :, :-1]], axis=2)
        right = jnp.concatenate([wg[:, :, 1:], wg[:, :, :1]], axis=2)
    shifted = s0 * left + s1 * wg + s2 * right        # (1, 1, N)

    # --- sharpening: clamp to tiny positive, EXACT final normalization -------
    wpow = jnp.maximum(shifted, 1e-30) ** gamma
    w = wpow / (jnp.sum(wpow, axis=-1, keepdims=True) + 1e-16)   # sum(w) == 1 exactly

    w_state[...] = w                                  # carry to timestep t+1

    # --- memory read: r[m] = sum_n w[n] * mem[n, m]  (MXU, natural orientation)
    r = jnp.einsum('bqn,bnm->bqm', w, mem, preferred_element_type=jnp.float32)  # (1,1,M)

    # single lane-dense packed store: [ r | w | zero pad ] -> one unmasked DMA
    parts = [r, w]
    if P > M + N:
        parts.append(jnp.zeros((1, 1, P - M - N), jnp.float32))
    out_ref[...] = jnp.concatenate(parts, axis=2)


@jax.jit
def ntm_read_head_seq(embeddings_seq, fc_weight, fc_bias, memory, w_prev0):
    """Fused T-step NTMReadHead.

    embeddings_seq (T,B,C), fc_weight (M+6,C), fc_bias (M+6,), memory (B,N,M),
    w_prev0 (B,N)  ->  r_seq (T,B,M), w_seq (T,B,N)
    (step t uses the step t-1 read weights as w_prev, exactly like repeated
    application of the PyTorch module's forward).
    """
    T, B, C = embeddings_seq.shape
    _, N, M = memory.shape
    OUT = fc_weight.shape[0]
    P = ((M + N + 127) // 128) * 128                  # lane-dense packed output width

    # pack the tiny operands once (fewer DMA descriptors, params resident in VMEM)
    params = jnp.concatenate(
        [fc_weight.T.astype(jnp.float32), fc_bias.reshape(1, OUT).astype(jnp.float32)],
        axis=0)                                                   # (C+1, OUT)
    x = jnp.transpose(embeddings_seq.astype(jnp.float32), (1, 0, 2)).reshape(B * T, 1, C)
    w0 = w_prev0.astype(jnp.float32).reshape(B, 1, N)
    mem = memory.astype(jnp.float32)

    step_idx = lambda b, t: (b * T + t, 0, 0)

    packed = pl.pallas_call(
        _ntm_read_head_step_kernel,
        out_shape=jax.ShapeDtypeStruct((B * T, 1, P), jnp.float32),
        grid_spec=pltpu.PrefetchScalarGridSpec(
            num_scalar_prefetch=0,
            grid=(B, T),
            in_specs=[
                pl.BlockSpec((1, 1, C), step_idx),                # per-step embeddings
                pl.BlockSpec((C + 1, OUT), lambda b, t: (0, 0)),  # fc params: resident
                pl.BlockSpec((1, N, M), lambda b, t: (b, 0, 0)),  # memory row: resident over t
                pl.BlockSpec((1, 1, N), lambda b, t: (b, 0, 0)),  # initial w_prev
            ],
            out_specs=pl.BlockSpec((1, 1, P), step_idx),
            scratch_shapes=[pltpu.VMEM((1, 1, N), jnp.float32)],  # w carried across t
        ),
        compiler_params=pltpu.CompilerParams(
            dimension_semantics=("parallel", "arbitrary"),        # batch over TCs, time serial
            vmem_limit_bytes=32 * 1024 * 1024,                    # fits v7x's 64 MiB VMEM
        ),
    )(x, params, mem, w0)

    packed = packed.reshape(B, T, P)
    r_seq = jnp.transpose(packed[:, :, :M], (1, 0, 2))            # (T, B, M)
    w_seq = jnp.transpose(packed[:, :, M:M + N], (1, 0, 2))       # (T, B, N)
    return r_seq, w_seq


def ntm_read_head(embeddings, fc_weight, fc_bias, memory, w_prev):
    """Single-step wrapper with the exact module forward signature."""
    r_seq, w_seq = ntm_read_head_seq(embeddings[None], fc_weight, fc_bias, memory, w_prev)
    return r_seq[0], w_seq[0]


# ----------------------------- pure-JAX reference -----------------------------
def _reference_step(embeddings, fc_weight, fc_bias, memory, w_prev):
    """Faithful to the PyTorch NTMReadHead forward (softplus head activation)."""
    M = memory.shape[-1]
    o = embeddings @ fc_weight.T + fc_bias
    k = o[:, :M]
    beta = jax.nn.softplus(o[:, M:M + 1])
    g = jax.nn.sigmoid(o[:, M + 1:M + 2])
    s = jax.nn.softmax(jax.nn.softplus(o[:, M + 2:M + 5]), axis=1)
    gamma = 1.0 + jax.nn.softplus(o[:, M + 5:M + 6])
    memp = memory + 1e-16
    kp = k[:, None, :] + 1e-16
    cos = jnp.sum(memp * kp, -1) / jnp.maximum(
        jnp.linalg.norm(memp, axis=-1) * jnp.linalg.norm(kp, axis=-1), 1e-8)
    wc = jax.nn.softmax(beta * cos, axis=1)
    wg = g * wc + (1.0 - g) * w_prev
    left = jnp.concatenate([wg[:, -1:], wg[:, :-1]], axis=1)
    right = jnp.concatenate([wg[:, 1:], wg[:, :1]], axis=1)
    shifted = s[:, 0:1] * left + s[:, 1:2] * wg + s[:, 2:3] * right
    wpow = shifted ** gamma
    w = wpow / (jnp.sum(wpow, axis=1, keepdims=True) + 1e-16)
    r = jnp.einsum('bn,bnm->bm', w, memory)
    return r, w


def _reference_seq(embeddings_seq, fc_weight, fc_bias, memory, w_prev0):
    w = w_prev0
    rs, ws = [], []
    for t in range(embeddings_seq.shape[0]):
        r, w = _reference_step(embeddings_seq[t], fc_weight, fc_bias, memory, w)
        rs.append(r)
        ws.append(w)
    return jnp.stack(rs), jnp.stack(ws)


if __name__ == "__main__":
    T = 8            # fused timesteps
    B = 2            # batch
    C = 32           # controller_size
    N = 16           # memory rows
    M = 8            # memory word size
    OUT = M + 1 + 1 + 3 + 1   # read_lengths sum = 14

    key = jax.random.PRNGKey(0)
    k_w, k_b, k_e, k_m, k_p = jax.random.split(key, 5)

    # nn.init.xavier_uniform(fc_read.weight, gain=1.4); weight shape (OUT, C)
    bound = 1.4 * (6.0 / (C + OUT)) ** 0.5
    fc_weight = jax.random.uniform(k_w, (OUT, C), jnp.float32, -bound, bound)
    # nn.init.normal(fc_read.bias, std=0.01)
    fc_bias = 0.01 * jax.random.normal(k_b, (OUT,), jnp.float32)

    embeddings_seq = jax.random.normal(k_e, (T, B, C), jnp.float32)
    memory = jax.random.uniform(k_m, (B, N, M), jnp.float32, -0.1, 0.1)
    w_prev0 = jax.nn.softmax(jax.random.normal(k_p, (B, N), jnp.float32), axis=1)

    # --- fused multi-timestep call (the optimized path) ---
    r_seq, w_seq = ntm_read_head_seq(embeddings_seq, fc_weight, fc_bias, memory, w_prev0)
    jax.block_until_ready((r_seq, w_seq))

    r_ref, w_ref = _reference_seq(embeddings_seq, fc_weight, fc_bias, memory, w_prev0)
    # Approx EUP reciprocals (~2^-12 rel err) in the two inner softmaxes can
    # accumulate over the T-step recurrence; the final normalization is exact,
    # so a few e-4 relative error worst case -> 5e-3 / 1e-3 is a safe bound
    # while still catching any real logic error (which would be O(1)).
    assert jnp.allclose(r_seq, r_ref, rtol=5e-3, atol=1e-3), "read sequence mismatch"
    assert jnp.allclose(w_seq, w_ref, rtol=5e-3, atol=1e-3), "weight sequence mismatch"

    # --- single-step call (exact module forward semantics) ---
    r1, w1 = ntm_read_head(embeddings_seq[0], fc_weight, fc_bias, memory, w_prev0)
    jax.block_until_ready((r1, w1))
    r1_ref, w1_ref = _reference_step(embeddings_seq[0], fc_weight, fc_bias, memory, w_prev0)
    assert jnp.allclose(r1, r1_ref, rtol=2e-3, atol=5e-4), "single-step read mismatch"
    assert jnp.allclose(w1, w1_ref, rtol=2e-3, atol=5e-4), "single-step weights mismatch"

    print("KERNEL_OK")
</pallas_src>

<mosaic_0001>
module attributes {stable_mosaic.version = 11 : i64} {
  func.func @_ntm_read_head_step_kernel(%arg0: i32, %arg1: i32, %arg2: memref<1x1x32xf32, #tpu.memory_space<vmem>>, %arg3: memref<33x14xf32, #tpu.memory_space<vmem>>, %arg4: memref<1x16x8xf32, #tpu.memory_space<vmem>>, %arg5: memref<1x1x16xf32, #tpu.memory_space<vmem>>, %arg6: memref<1x1x128xf32, #tpu.memory_space<vmem>>, %arg7: memref<1x1x16xf32, #tpu.memory_space<vmem>>) attributes {dimension_semantics = [#tpu.dimension_semantics<parallel>, #tpu.dimension_semantics<arbitrary>], iteration_bounds = array<i64: 2, 8>, scalar_prefetch = 0 : i64, scratch_operands = 1 : i64, tpu.core_type = #tpu.core_type<tc>, window_params = [{transform_indices = @transform_0, window_bounds = array<i64: 1, 1, 32>}, {pipeline_mode = #tpu.pipeline_mode<synchronous>, transform_indices = @transform_1, window_bounds = array<i64: 33, 14>}, {transform_indices = @transform_2, window_bounds = array<i64: 1, 16, 8>}, {transform_indices = @transform_3, window_bounds = array<i64: 1, 1, 16>}, {transform_indices = @transform_4, window_bounds = array<i64: 1, 1, 128>}]} {
    %c0_i32 = arith.constant 0 : i32
    %0 = arith.cmpi eq, %arg1, %c0_i32 : i32
    %1 = arith.extui %0 : i1 to i32
    %c0_i32_0 = arith.constant 0 : i32
    %2 = arith.cmpi ne, %1, %c0_i32_0 : i32
    scf.if %2 {
      %c0_35 = arith.constant 0 : index
      %c0_36 = arith.constant 0 : index
      %c0_37 = arith.constant 0 : index
      %122 = vector.load %arg5[%c0_35, %c0_36, %c0_37] : memref<1x1x16xf32, #tpu.memory_space<vmem>>, vector<1x1x16xf32>
      %c0_38 = arith.constant 0 : index
      %c0_39 = arith.constant 0 : index
      %c0_40 = arith.constant 0 : index
      %123 = vector.load %arg7[%c0_38, %c0_39, %c0_40] : memref<1x1x16xf32, #tpu.memory_space<vmem>>, vector<1x1x16xf32>
      tpu.vector_store %arg7[%c0_38, %c0_39, %c0_40], %122 {strides = array<i32>} : memref<1x1x16xf32, #tpu.memory_space<vmem>>, vector<1x1x16xf32>,
    } else {
    }
    %c0 = arith.constant 0 : index
    %c0_1 = arith.constant 0 : index
    %c0_2 = arith.constant 0 : index
    %3 = vector.load %arg4[%c0, %c0_1, %c0_2] : memref<1x16x8xf32, #tpu.memory_space<vmem>>, vector<1x16x8xf32>
    %c0_3 = arith.constant 0 : index
    %c0_4 = arith.constant 0 : index
    %c0_5 = arith.constant 0 : index
    %4 = vector.load %arg2[%c0_3, %c0_4, %c0_5] : memref<1x1x32xf32, #tpu.memory_space<vmem>>, vector<1x1x32xf32>
    %5 = vector.shape_cast %4 : vector<1x1x32xf32> to vector<1x32xf32>
    %c0_6 = arith.constant 0 : index
    %c0_7 = arith.constant 0 : index
    %6 = vector.load %arg3[%c0_6, %c0_7] : memref<33x14xf32, #tpu.memory_space<vmem>>, vector<33x14xf32>
    %7 = vector.extract_strided_slice %6 {offsets = [0, 0], sizes = [32, 14], strides = [1, 1]} : vector<33x14xf32> to vector<32x14xf32>
    %8 = vector.extract_strided_slice %6 {offsets = [32, 0], sizes = [1, 14], strides = [1, 1]} : vector<33x14xf32> to vector<1x14xf32>
    %cst = arith.constant dense<0.000000e+00> : vector<1x14xf32>
    %9 = tpu.matmul %5, %7, %cst {dimension_numbers = #tpu.dot_dimension_numbers<[1], [0], [0], [1], [0, 0, 1, 1], [], []>} : vector<1x32xf32>, vector<32x14xf32>, vector<1x14xf32> -> vector<1x14xf32>
    %10 = arith.addf %9, %8 : vector<1x14xf32>
    %11 = vector.extract_strided_slice %10 {offsets = [0, 8], sizes = [1, 6], strides = [1, 1]} : vector<1x14xf32> to vector<1x6xf32>
    %cst_8 = arith.constant 0.000000e+00 : f32
    %12 = vector.broadcast %cst_8 : f32 to vector<1x6xf32>
    %13 = arith.maximumf %11, %12 : vector<1x6xf32>
    %14 = math.absf %11 : vector<1x6xf32>
    %cst_9 = arith.constant 0.000000e+00 : f32
    %15 = vector.broadcast %cst_9 : f32 to vector<1x6xf32>
    %16 = arith.subf %15, %14 : vector<1x6xf32>
    %17 = math.exp %16 : vector<1x6xf32>
    %18 = math.log1p %17 : vector<1x6xf32>
    %19 = arith.addf %13, %18 : vector<1x6xf32>
    %20 = vector.extract_strided_slice %19 {offsets = [0, 0], sizes = [1, 1], strides = [1, 1]} : vector<1x6xf32> to vector<1x1xf32>
    %21 = vector.shape_cast %20 : vector<1x1xf32> to vector<1x1x1xf32>
    %22 = vector.extract_strided_slice %11 {offsets = [0, 1], sizes = [1, 1], strides = [1, 1]} : vector<1x6xf32> to vector<1x1xf32>
    %cst_10 = arith.constant 5.000000e-01 : f32
    %23 = vector.broadcast %cst_10 : f32 to vector<1x1xf32>
    %24 = arith.mulf %23, %22 : vector<1x1xf32>
    %25 = math.tanh %24 : vector<1x1xf32>
    %cst_11 = arith.constant 1.000000e+00 : f32
    %26 = vector.broadcast %cst_11 : f32 to vector<1x1xf32>
    %27 = arith.addf %25, %26 : vector<1x1xf32>
    %cst_12 = arith.constant 5.000000e-01 : f32
    %28 = vector.broadcast %cst_12 : f32 to vector<1x1xf32>
    %29 = arith.mulf %28, %27 : vector<1x1xf32>
    %30 = vector.shape_cast %29 : vector<1x1xf32> to vector<1x1x1xf32>
    %31 = vector.extract_strided_slice %19 {offsets = [0, 5], sizes = [1, 1], strides = [1, 1]} : vector<1x6xf32> to vector<1x1xf32>
    %cst_13 = arith.constant 1.000000e+00 : f32
    %32 = vector.broadcast %cst_13 : f32 to vector<1x1xf32>
    %33 = arith.addf %32, %31 : vector<1x1xf32>
    %34 = vector.shape_cast %33 : vector<1x1xf32> to vector<1x1x1xf32>
    %35 = vector.extract_strided_slice %19 {offsets = [0, 2], sizes = [1, 1], strides = [1, 1]} : vector<1x6xf32> to vector<1x1xf32>
    %36 = vector.extract_strided_slice %19 {offsets = [0, 3], sizes = [1, 1], strides = [1, 1]} : vector<1x6xf32> to vector<1x1xf32>
    %37 = vector.extract_strided_slice %19 {offsets = [0, 4], sizes = [1, 1], strides = [1, 1]} : vector<1x6xf32> to vector<1x1xf32>
    %38 = arith.maximumf %35, %36 : vector<1x1xf32>
    %39 = arith.maximumf %38, %37 : vector<1x1xf32>
    %40 = arith.subf %35, %39 : vector<1x1xf32>
    %41 = math.exp %40 : vector<1x1xf32>
    %42 = arith.subf %36, %39 : vector<1x1xf32>
    %43 = math.exp %42 : vector<1x1xf32>
    %44 = arith.subf %37, %39 : vector<1x1xf32>
    %45 = math.exp %44 : vector<1x1xf32>
    %46 = arith.addf %41, %43 : vector<1x1xf32>
    %47 = arith.addf %46, %45 : vector<1x1xf32>
    %48 = tpu.reciprocal %47 {approx = true} : vector<1x1xf32> -> vector<1x1xf32>
    %49 = arith.mulf %41, %48 : vector<1x1xf32>
    %50 = vector.shape_cast %49 : vector<1x1xf32> to vector<1x1x1xf32>
    %51 = arith.mulf %43, %48 : vector<1x1xf32>
    %52 = vector.shape_cast %51 : vector<1x1xf32> to vector<1x1x1xf32>
    %53 = arith.mulf %45, %48 : vector<1x1xf32>
    %54 = vector.shape_cast %53 : vector<1x1xf32> to vector<1x1x1xf32>
    %55 = vector.extract_strided_slice %10 {offsets = [0, 0], sizes = [1, 8], strides = [1, 1]} : vector<1x14xf32> to vector<1x8xf32>
    %56 = vector.shape_cast %55 : vector<1x8xf32> to vector<1x1x8xf32>
    %57 = vector.broadcast %56 : vector<1x1x8xf32> to vector<1x16x8xf32>
    %58 = arith.mulf %3, %57 : vector<1x16x8xf32>
    %cst_14 = arith.constant dense<0.000000e+00> : vector<1x16xf32>
    %59 = vector.multi_reduction <add>, %58, %cst_14 [2] : vector<1x16x8xf32> to vector<1x16xf32>
    %60 = vector.shape_cast %59 : vector<1x16xf32> to vector<1x1x16xf32>
    %61 = arith.mulf %3, %3 : vector<1x16x8xf32>
    %cst_15 = arith.constant dense<0.000000e+00> : vector<1x16xf32>
    %62 = vector.multi_reduction <add>, %61, %cst_15 [2] : vector<1x16x8xf32> to vector<1x16xf32>
    %63 = vector.shape_cast %62 : vector<1x16xf32> to vector<1x1x16xf32>
    %64 = arith.mulf %56, %56 : vector<1x1x8xf32>
    %cst_16 = arith.constant dense<0.000000e+00> : vector<1x1xf32>
    %65 = vector.multi_reduction <add>, %64, %cst_16 [2] : vector<1x1x8xf32> to vector<1x1xf32>
    %66 = vector.shape_cast %65 : vector<1x1xf32> to vector<1x1x1xf32>
    %67 = vector.broadcast %66 : vector<1x1x1xf32> to vector<1x1x16xf32>
    %68 = arith.mulf %63, %67 : vector<1x1x16xf32>
    %cst_17 = arith.constant 1.000000e-16 : f32
    %69 = vector.broadcast %cst_17 : f32 to vector<1x1x16xf32>
    %70 = arith.maximumf %68, %69 : vector<1x1x16xf32>
    %71 = math.rsqrt %70 : vector<1x1x16xf32>
    %72 = vector.broadcast %21 : vector<1x1x1xf32> to vector<1x1x16xf32>
    %73 = arith.mulf %72, %60 : vector<1x1x16xf32>
    %74 = arith.mulf %73, %71 : vector<1x1x16xf32>
    %cst_18 = arith.constant dense<0xFF800000> : vector<1x1xf32>
    %75 = vector.multi_reduction <maximumf>, %74, %cst_18 [2] : vector<1x1x16xf32> to vector<1x1xf32>
    %76 = vector.shape_cast %75 : vector<1x1xf32> to vector<1x1x1xf32>
    %77 = vector.broadcast %76 : vector<1x1x1xf32> to vector<1x1x16xf32>
    %78 = arith.subf %74, %77 : vector<1x1x16xf32>
    %79 = math.exp %78 : vector<1x1x16xf32>
    %cst_19 = arith.constant dense<0.000000e+00> : vector<1x1xf32>
    %80 = vector.multi_reduction <add>, %79, %cst_19 [2] : vector<1x1x16xf32> to vector<1x1xf32>
    %81 = vector.shape_cast %80 : vector<1x1xf32> to vector<1x1x1xf32>
    %82 = tpu.reciprocal %81 {approx = true} : vector<1x1x1xf32> -> vector<1x1x1xf32>
    %83 = vector.broadcast %82 : vector<1x1x1xf32> to vector<1x1x16xf32>
    %84 = arith.mulf %79, %83 : vector<1x1x16xf32>
    %c0_20 = arith.constant 0 : index
    %c0_21 = arith.constant 0 : index
    %c0_22 = arith.constant 0 : index
    %85 = vector.load %arg7[%c0_20, %c0_21, %c0_22] : memref<1x1x16xf32, #tpu.memory_space<vmem>>, vector<1x1x16xf32>
    %86 = vector.broadcast %30 : vector<1x1x1xf32> to vector<1x1x16xf32>
    %87 = arith.mulf %86, %84 : vector<1x1x16xf32>
    %cst_23 = arith.constant 1.000000e+00 : f32
    %88 = vector.broadcast %cst_23 : f32 to vector<1x1x1xf32>
    %89 = arith.subf %88, %30 : vector<1x1x1xf32>
    %90 = vector.broadcast %89 : vector<1x1x1xf32> to vector<1x1x16xf32>
    %91 = arith.mulf %90, %85 : vector<1x1x16xf32>
    %92 = arith.addf %87, %91 : vector<1x1x16xf32>
    %93 = vector.extract_strided_slice %92 {offsets = [0, 0, 15], sizes = [1, 1, 1], strides = [1, 1, 1]} : vector<1x1x16xf32> to vector<1x1x1xf32>
    %94 = vector.extract_strided_slice %92 {offsets = [0, 0, 0], sizes = [1, 1, 15], strides = [1, 1, 1]} : vector<1x1x16xf32> to vector<1x1x15xf32>
    %95 = tpu.concatenate %93, %94 in 2 : vector<1x1x1xf32>, vector<1x1x15xf32> -> vector<1x1x16xf32>
    %96 = vector.extract_strided_slice %92 {offsets = [0, 0, 1], sizes = [1, 1, 15], strides = [1, 1, 1]} : vector<1x1x16xf32> to vector<1x1x15xf32>
    %97 = vector.extract_strided_slice %92 {offsets = [0, 0, 0], sizes = [1, 1, 1], strides = [1, 1, 1]} : vector<1x1x16xf32> to vector<1x1x1xf32>
    %98 = tpu.concatenate %96, %97 in 2 : vector<1x1x15xf32>, vector<1x1x1xf32> -> vector<1x1x16xf32>
    %99 = vector.broadcast %50 : vector<1x1x1xf32> to vector<1x1x16xf32>
    %100 = arith.mulf %99, %95 : vector<1x1x16xf32>
    %101 = vector.broadcast %52 : vector<1x1x1xf32> to vector<1x1x16xf32>
    %102 = arith.mulf %101, %92 : vector<1x1x16xf32>
    %103 = arith.addf %100, %102 : vector<1x1x16xf32>
    %104 = vector.broadcast %54 : vector<1x1x1xf32> to vector<1x1x16xf32>
    %105 = arith.mulf %104, %98 : vector<1x1x16xf32>
    %106 = arith.addf %103, %105 : vector<1x1x16xf32>
    %cst_24 = arith.constant 1.000000e-30 : f32
    %107 = vector.broadcast %cst_24 : f32 to vector<1x1x16xf32>
    %108 = arith.maximumf %106, %107 : vector<1x1x16xf32>
    %109 = vector.broadcast %34 : vector<1x1x1xf32> to vector<1x1x16xf32>
    %110 = math.powf %108, %109 : vector<1x1x16xf32>
    %cst_25 = arith.constant dense<0.000000e+00> : vector<1x1xf32>
    %111 = vector.multi_reduction <add>, %110, %cst_25 [2] : vector<1x1x16xf32> to vector<1x1xf32>
    %112 = vector.shape_cast %111 : vector<1x1xf32> to vector<1x1x1xf32>
    %cst_26 = arith.constant 1.000000e-16 : f32
    %113 = vector.broadcast %cst_26 : f32 to vector<1x1x1xf32>
    %114 = arith.addf %112, %113 : vector<1x1x1xf32>
    %115 = vector.broadcast %114 : vector<1x1x1xf32> to vector<1x1x16xf32>
    %116 = arith.divf %110, %115 : vector<1x1x16xf32>
    %c0_27 = arith.constant 0 : index
    %c0_28 = arith.constant 0 : index
    %c0_29 = arith.constant 0 : index
    %117 = vector.load %arg7[%c0_27, %c0_28, %c0_29] : memref<1x1x16xf32, #tpu.memory_space<vmem>>, vector<1x1x16xf32>
    tpu.vector_store %arg7[%c0_27, %c0_28, %c0_29], %116 {strides = array<i32>} : memref<1x1x16xf32, #tpu.memory_space<vmem>>, vector<1x1x16xf32>,
    "tpu.trace_start"() <{level = 10 : i32, message = "bqn,bnm->bqm"}> : () -> ()
    %cst_30 = arith.constant dense<0.000000e+00> : vector<1x1x8xf32>
    %118 = tpu.matmul %116, %3, %cst_30 {dimension_numbers = #tpu.dot_dimension_numbers<[2], [1], [1], [2], [0, 0, 0, 1, 1, 2], [0], [0]>} : vector<1x1x16xf32>, vector<1x16x8xf32>, vector<1x1x8xf32> -> vector<1x1x8xf32>
    %cst_31 = arith.constant 0.000000e+00 : f32
    "tpu.trace_stop"() : () -> ()
    %119 = vector.broadcast %cst_31 : f32 to vector<1x1x104xf32>
    %120 = tpu.concatenate %118, %116, %119 in 2 : vector<1x1x8xf32>, vector<1x1x16xf32>, vector<1x1x104xf32> -> vector<1x1x128xf32>
    %c0_32 = arith.constant 0 : index
    %c0_33 = arith.constant 0 : index
    %c0_34 = arith.constant 0 : index
    %121 = vector.load %arg6[%c0_32, %c0_33, %c0_34] : memref<1x1x128xf32, #tpu.memory_space<vmem>>, vector<1x1x128xf32>
    tpu.vector_store %arg6[%c0_32, %c0_33, %c0_34], %120 {strides = array<i32>} : memref<1x1x128xf32, #tpu.memory_space<vmem>>, vector<1x1x128xf32>,
    return
  }
  func.func @transform_0(%arg0: i32, %arg1: i32) -> (i32, i32, i32) {
    %c8_i32 = arith.constant 8 : i32
    %0 = arith.muli %arg0, %c8_i32 : i32
    %1 = arith.addi %0, %arg1 : i32
    %c0_i32 = arith.constant 0 : i32
    %c0_i32_0 = arith.constant 0 : i32
    %c0_i32_1 = arith.constant 0 : i32
    return %1, %c0_i32, %c0_i32_0 : i32, i32, i32
  }
  func.func @transform_1(%arg0: i32, %arg1: i32) -> (i32, i32) {
    %c0_i32 = arith.constant 0 : i32
    %c0_i32_0 = arith.constant 0 : i32
    %c0_i32_1 = arith.constant 0 : i32
    return %c0_i32, %c0_i32_0 : i32, i32
  }
  func.func @transform_2(%arg0: i32, %arg1: i32) -> (i32, i32, i32) {
    %c0_i32 = arith.constant 0 : i32
    %c0_i32_0 = arith.constant 0 : i32
    %c0_i32_1 = arith.constant 0 : i32
    return %arg0, %c0_i32, %c0_i32_0 : i32, i32, i32
  }
  func.func @transform_3(%arg0: i32, %arg1: i32) -> (i32, i32, i32) {
    %c0_i32 = arith.constant 0 : i32
    %c0_i32_0 = arith.constant 0 : i32
    %c0_i32_1 = arith.constant 0 : i32
    return %arg0, %c0_i32, %c0_i32_0 : i32, i32, i32
  }
  func.func @transform_4(%arg0: i32, %arg1: i32) -> (i32, i32, i32) {
    %c8_i32 = arith.constant 8 : i32
    %0 = arith.muli %arg0, %c8_i32 : i32
    %1 = arith.addi %0, %arg1 : i32
    %c0_i32 = arith.constant 0 : i32
    %c0_i32_0 = arith.constant 0 : i32
    %c0_i32_1 = arith.constant 0 : i32
    return %1, %c0_i32, %c0_i32_0 : i32, i32, i32
  }
}

</mosaic_0001>

<bundles_post_ra>
// kernel: ntm_read_head_seq.1
= control target key start
LH: loop header
LB: loop body
LE: loop exit
PB: predicated region body
PF: predicated region fallthrough
CT: control target
= control target key end

     0   :  { %s1016_s15 = smov 0   ;;  %s1018_s16 = smov 0   ;;  %s1158_s0 = inlined_call_operand.vmem [shape: f32[16,1,32], index: 0, kind: input, shape index: {}]   ;;  %s1159_s1 = inlined_call_operand.vmem [shape: f32[33,14], index: 1, kind: input, shape index: {}]   ;;  %s1160_s2 = inlined_call_operand.vmem [shape: f32[2,16,8], index: 2, kind: input, shape index: {}]   ;;  %s1161_s3 = inlined_call_operand.vmem [shape: f32[2,1,16], index: 3, kind: input, shape index: {}]   ;;  %s1162_s4 = inlined_call_operand.vmem [shape: f32[16,1,128], index: 4, kind: output, shape index: {}]  }
   0x1   :  { %s1020_s17 = smov 0   ;;  %s1022_s18 = smov 0  }
   0x2   :  { %s1024_s19 = smov 0  }
   0x3 LB: > { %s23_s20 = sadd.s32 1, %s963_s17  ;;  %s26_s21 = sadd.s32 1, %s967_s18  ;;  %s971_s19 = sphi %s1024_s19, %s14_s19   ;;  %s967_s18 = sphi %s1022_s18, %s1173_s18   ;;  %s963_s17 = sphi %s1020_s17, %s1172_s17   ;;  %s959_s16 = sphi %s1018_s16, %s1171_s16   ;;  %s955_s15 = sphi %s1016_s15, %s1170_s15  }
   0x4   : > { %p24_p0 = scmp.ge.s32.totalorder %s23_s20, 8  ;;  %p741_p1 = scmp.ge.s32.totalorder %s971_s19, 1 }
   0x5   : > { %p202_p2 = scmp.lt.s32.totalorder %s971_s19, 17 }
   0x6   : > { %s1175_s20 = smov (%p24_p0, %s23_s20), 0  ;;  %s1177_s21 = smov (!%p24_p0, %s26_s21), %s967_s18 }
   0x7   : > { %p203_p3 = pnand %p741_p1, %p202_p2  ;;  %p28_p4 = scmp.ge.s32.totalorder %s1177_s21, 2 }
   0x8   : > { %s742_s22 = sshll.u32 (!%p203_p3), %s959_s16, 3  ;;  %p243_p5 = scmp.lt.s32.totalorder (!%p203_p3), %s959_s16, 1 }
   0x9   : > { %s1179_s21 = smov (%p28_p4, %s1177_s21), 0  ;;  %206 = sbr.rel (%p203_p3) target bundleno = 1414 (0x586), region = 36 }
   0xa   : > { %s237_s23 = sadd.s32 (!%p203_p3), %s955_s15, %s742_s22  ;;  %p746_p7 = scmp.ne.s32.totalorder (!%p203_p3), %s955_s15, 0 }
   0xb   : > { %p238_p6 = scmp.lt.s32.totalorder (!%p203_p3), %s237_s23, 15 }
  0x10   : > { %s1181_s16 = smov (!%p243_p5, %s959_s16), 1  ;;  %s1183_s23 = smov (!%p238_p6, %s237_s23), 15 }
  0x11   : > { %s751_s24 = sshll.u32 %s1181_s16, 4  ;;  %s250_s27 = scalar_lea.vmem %s1161_s3, %s1181_s16  ;;  %vm263_vm0 = vcmask (!%p746_p7), 122880  }
  0x12   : > { %s240_s30 = scalar_lea.vmem %s1158_s0, %s1183_s23  ;;  %s1058_s7 = scalar_lea.vmem %s1160_s2, %s751_s24  ;;  %v262_v0 = vld [vmem:[%s250_s27] sm:$0x1] (!%p746_p7) }
  0x13   : > { %s255_s10 = scalar_lea.vmem %s1162_s4, %s1183_s23  ;;  %261 = sbr.rel (%p746_p7) target bundleno = 26 (0x1a), region = 40  ;;  %264 = vst.msk [vmem:[#allocation2] sm:$0x1] (!%p746_p7), %vm263_vm0, %v262_v0 }
  0x1a PF: > { %v268_v1 = vld [vmem:[%s1159_s1] sm:$0xff]  ;;  %v269_v2 = vld [vmem:[%s1159_s1 + $0x8] sm:$0xff]  ;;  %v270_v3 = vld [vmem:[%s1159_s1 + $0x10] sm:$0xff]  ;;  %v973_v4 = vmov 0.0|0.0   ;;  %vm974_vm1 = vmmov 0   ;;  %v975_v7 = vmov 0.0   ;;  %v413_v37 = vlaneseq }
  0x1b   : > { %778 = vmatprep.subr.bf16.mxu0 %v973_v4  ;;  %v779_v5 = vpack.c.bf16 %v269_v2, %v268_v1  ;;  %v271_v6 = vld [vmem:[%s1159_s1 + $0x18] sm:$0xff]  ;;  %768 = vmatprep.mubr.msk.f32.mxu0 %vm974_vm1, %v975_v7  ;;  %v267_v9 = vld [vmem:[%s240_s30] sm:$0x1]  ;;  %vm273_vm2 = vcmask 261120   ;;  %v1077_v10 = vld [vmem:[%s1058_s7 + $0x8] sm:$0xff]  ;;  %vm1163_vm3 = vcmask 64512  }
  0x1c   : > { %784 = vmatprep.subr.bf16.mxu1 %v973_v4  ;;  %775 = vmatprep.mubr.msk.f32.mxu1 %vm974_vm1, %v975_v7  ;;  %v782_v8 = vpack.c.bf16 %v271_v6, %v270_v3  ;;  %v427_v11 = vmul.f32 %v1077_v10, %v1077_v10  ;;  %v272_v13 = vld [vmem:[%s1159_s1 + $0x20] sm:$0x1]  ;;  %vm435_vm4 = vcmask 57344   ;;  %v976_v35 = vmov 0   ;;  %s977_s27 = smov 127   ;;  %s978_s28 = smov 126  }
  0x1d   : > { %780 = vmatpush3.bf16.msra.mxu0 %v779_v5  ;;  %v1088_v17 = vld [vmem:[%s1058_s7] sm:$0xff]  ;;  %898 = vset.pattern.permute.xlu0 %v976_v35  ;;  %v414_v38 = vshrl.u32 %v413_v37, 7  ;;  %v979_v58 = vmov 8   ;;  %s980_s29 = smov 1   ;;  %s981_s30 = smov 2   ;;  %v982_v60 = vmov 9  }
  0x1e   : > { %781 = vmatprep.subr.bf16.mxu0 %v973_v4  ;;  %v431_v12 = vsel %vm1163_vm3, %v427_v11, 0.0  ;;  %v426_v20 = vmul.f32 %v1088_v17, %v1088_v17  ;;  %897 = vset.pattern.permute.xlu1 %v976_v35  ;;  %v458_v61 = vand.u32 127, %v413_v37  ;;  %vm468_vm6 = vcmask 130112   ;;  %s987_s5 = smov 113   ;;  %s988_s6 = smov 15  }
  0x1f   : > { %432 = vadd.xlane.f32.xlu1 %v431_v12  ;;  %v415_v39 = vsub.s32 0, %v414_v38  ;;  %vm1164_vm7 = vcmask 122880   ;;  %vm525_vm8 = vcmask 7168   ;;  %vm533_vm9 = vcmask 121856   ;;  %s990_s7 = smov 8  }
  0x20   : > { %v428_v24 = vsel %vm1163_vm3, %v426_v20, 0.0  ;;  %v463_v62 = vadd.s32 4294967288, %v458_v61  ;;  %v461_v0 = vsub.s32 %v458_v61, %v414_v38 }
  0x21   : > { %783 = vmatpush3.bf16.msra.mxu0 %v782_v8 }
  0x22   : > { %v466_v2 = vsub.s32 %v463_v62, %v414_v38 }
  0x24   : > { %769 = vmatmul.mubr.msk.f32.vlgmr.msra.gmra.mrb[0].mxu0 %vm273_vm2, %v267_v9 }
  0xac   : > { %v433_v46 = vpop.xlane.xlu1 %432 }
  0xf7   : > { %v343_v14 = vpop.f32.mrb[0].mxu0 }
  0xf8   : > { %v1085_v15 = vadd.f32 %v343_v14, %v272_v13  ;;  %v770_v16 = vpop.f32.mrb[1].mxu0 }
  0xfa   : > { %v348_v18 = vand.u32 2147483647, %v1085_v15  ;;  %v434_v19 = vmul.f32 %v1085_v15, %v1085_v15  ;;  %v347_v33 = vmax.f32 %v1085_v15, 0.0  ;;  %v416_v40 = vrot.slane %v1085_v15, %v415_v39 }
  0xfb   : > { %v362_v12 = vmul.f32 0.5, %v1085_v15 }
  0xfc   : > { %v349_v21 = vsub.f32 0.0, %v348_v18  ;;  %v436_v22 = vsel %vm435_vm4, %v434_v19, 0.0  ;;  %v418_v41 = vmul.f32 %v416_v40, %v1077_v10  ;;  %v417_v43 = vmul.f32 %v416_v40, %v1088_v17 }
  0xfd   : > { %437 = vadd.xlane.f32.xlu0 %v436_v22 }
  0xfe   : > { %v350_v23 = vmul.f32 1.442695, %v349_v21  ;;  %v423_v42 = vsel %vm1163_vm3, %v418_v41, 0.0  ;;  %v420_v44 = vsel %vm1163_vm3, %v417_v43, 0.0 }
 0x100   : > { %905 = vpow2.f32 %v350_v23 }
 0x101   : > { %429 = vadd.xlane.f32.xlu0 %v428_v24 }
 0x10a   : > { %v906_v25 = vpop.eup %905 }
 0x10b   : > { %v352_v26 = vadd.f32 1.0, %v906_v25  ;;  %v355_v27 = vmul.f32 -0.5, %v906_v25  ;;  %v358_v29 = vand.u32 2147483647, %v906_v25 }
 0x10d   : > { %907 = vlog2.f32 %v352_v26  ;;  %v356_v28 = vadd.f32 1.0, %v355_v27  ;;  %vm359_vm5 = vcmp.lt.f32.partialorder %v358_v29, 0.0004427343 }
 0x10f   : > { %v357_v32 = vmul.f32 %v906_v25, %v356_v28 }
 0x117   : > { %v908_v30 = vpop.eup %907 }
 0x118   : > { %v354_v31 = vmul.f32 0.6931472, %v908_v30  ;;  %v983_v30 = vmov 10  }
 0x11a   : > { %v360_v34 = vsel %vm359_vm5, %v357_v32, %v354_v31 }
 0x11b   : > { %v1099_v36 = vadd.f32 %v360_v34, %v347_v33 }
 0x11d   : > { %368 = vrot.lane.b32.xlu1 %v1099_v36, %s977_s27  ;;  %372 = vrot.lane.b32.xlu0 %v1099_v36, %s978_s28 }
 0x13c   : > { %424 = vadd.xlane.f32.xlu0 %v423_v42 }
 0x141   : > { %421 = vadd.xlane.f32.xlu1 %v420_v44 }
 0x18a   : > { %v438_v45 = vpop.xlane.xlu0 %437 }
 0x18b   : > { %v443_v47 = vrot.slane %v438_v45, %v415_v39  ;;  %v984_v45 = vmov 11  }
 0x18d   : > { %v446_v48 = vmul.f32 %v443_v47, %v433_v46 }
 0x18e   : > { %v430_v49 = vpop.xlane.xlu0 %429 }
 0x18f   : > { %v448_v50 = vmax.f32 %v446_v48, 1e-16  ;;  %v445_v51 = vmul.f32 %v443_v47, %v430_v49  ;;  %v369_v55 = vpop.permute.xlu1 %368  ;;  %v985_v48 = vmov 13  }
 0x190   : > { %v371_v56 = vmax.f32 %v1099_v36, %v369_v55 }
 0x191   : > { %909 = vrsqrt.f32 %v448_v50  ;;  %v447_v52 = vmax.f32 %v445_v51, 1e-16 }
 0x192   : > { %v373_v57 = vpop.permute.xlu0 %372 }
 0x193   : > { %911 = vrsqrt.f32 %v447_v52  ;;  %v375_v59 = vmax.f32 %v371_v56, %v373_v57 }
 0x194   : > { %913 = vtanh.f32 %v362_v12 }
 0x195   : > { %v376_v31 = vsub.f32 %v1099_v36, %v375_v59 }
 0x197   : > { %v377_v32 = vmul.f32 1.442695, %v376_v31 }
 0x19b   : > { %v910_v53 = vpop.eup %909 }
 0x19c   : > { %478 = vperm.xlu0 %898, %v910_v53   ;;  %v986_v53 = vmov 12  }
 0x19d   : > { %v912_v54 = vpop.eup %911 }
 0x19e   : > { %475 = vperm.xlu1 %897, %v912_v54   ;;  %v914_v25 = vpop.eup %913 }
 0x19f   : > { %v364_v15 = vadd.f32 1.0, %v914_v25 }
 0x1a0   : > { %904 = vset.pattern.permute.xlu0 %v985_v48 }
 0x1a1   : > { %v365_v27 = vmul.f32 0.5, %v364_v15  ;;  %v989_v15 = vmov 2139095040  }
 0x1a2   : > { %899 = vset.pattern.permute.xlu1 %v979_v58  ;;  %v503_v58 = vld [vmem:[#allocation2] sm:$0x1] }
 0x1a3   : > { %452 = vperm.xlu1 %899, %v1099_v36   ;;  %v510_v29 = vsub.f32 1.0, %v365_v27 }
 0x1a7   : > { %380 = vrot.lane.b32.xlu1 %v375_v59, %s980_s29 }
 0x1a8   : > { %900 = vset.pattern.permute.xlu1 %v982_v60 }
 0x1ab   : > { %386 = vrot.lane.b32.xlu1 %v375_v59, %s981_s30 }
 0x1c9   : > { %v425_v1 = vpop.xlane.xlu0 %424 }
 0x1ca   : > { %v467_v6 = vrot.slane %v425_v1, %v466_v2 }
 0x1ce   : > { %v422_v63 = vpop.xlane.xlu1 %421 }
 0x1cf   : > { %v462_v4 = vrot.slane %v422_v63, %v461_v0  ;;  %v366_v63 = vadd.f32 1.0, %v1099_v36 }
 0x1d1   : > { %v469_v9 = vsel %vm468_vm6, %v467_v6, %v462_v4 }
 0x21b   : > { %v479_v5 = vpop.permute.xlu0 %478 }
 0x21c   : > { %v487_v8 = vrot.slane %v479_v5, %v466_v2 }
 0x21d   : > { %v476_v3 = vpop.permute.xlu1 %475 }
 0x21e   : > { %v483_v7 = vrot.slane %v476_v3, %v461_v0 }
 0x220   : > { %v488_v14 = vsel %vm468_vm6, %v487_v8, %v483_v7 }
 0x222   : > { %v453_v11 = vpop.permute.xlu1 %452 }
 0x223   : > { %v471_v13 = vmul.f32 %v469_v9, %v453_v11 }
 0x225   : > { %v490_v16 = vmul.f32 %v488_v14, %v471_v13 }
 0x226   : > { %v381_v18 = vpop.permute.xlu1 %380 }
 0x227   : > { %v383_v19 = vsub.f32 %v1099_v36, %v381_v18  ;;  %v492_v20 = vsel %vm1164_vm7, %v490_v16, -inf }
 0x228   : > { %493 = vmax.xlane.f32.xlu1 %v492_v20 }
 0x229   : > { %v384_v21 = vmul.f32 1.442695, %v383_v19 }
 0x22a   : > { %v387_v22 = vpop.permute.xlu1 %386 }
 0x22b   : > { %915 = vpow2.f32 %v384_v21  ;;  %v389_v23 = vsub.f32 %v1099_v36, %v387_v22 }
 0x22d   : > { %v390_v24 = vmul.f32 1.442695, %v389_v23 }
 0x22f   : > { %917 = vpow2.f32 %v390_v24 }
 0x230   : > { %919 = vpow2.f32 %v377_v32 }
 0x235   : > { %v916_v26 = vpop.eup %915 }
 0x236   : > { %393 = vrot.lane.b32.xlu0 %v916_v26, %s977_s27 }
 0x239   : > { %v918_v28 = vpop.eup %917  ;;  %506 = vperm.xlu1 %900, %v365_v27  }
 0x23a   : > { %398 = vrot.lane.b32.xlu0 %v918_v28, %s978_s28  ;;  %v920_v34 = vpop.eup %919 }
 0x23d   : > { %513 = vperm.xlu1 %900, %v510_v29  }
 0x241   : > { %901 = vset.pattern.permute.xlu1 %v983_v30 }
 0x2a8   : > { %v394_v33 = vpop.permute.xlu0 %393 }
 0x2a9   : > { %v396_v37 = vadd.f32 %v920_v34, %v394_v33 }
 0x2ac   : > { %v399_v38 = vpop.permute.xlu0 %398 }
 0x2ad   : > { %v401_v39 = vadd.f32 %v399_v38, %v396_v37 }
 0x2af   : > { %921 = vrcp.f32 %v401_v39 }
 0x2b5   : > { %v494_v40 = vpop.xlane.xlu1 %493 }
 0x2b6   : > { %v495_v41 = vsub.f32 %v490_v16, %v494_v40 }
 0x2b8   : > { %v496_v42 = vmul.f32 1.442695, %v495_v41 }
 0x2b9   : > { %v922_v43 = vpop.eup %921  ;;  %v507_v49 = vpop.permute.xlu1 %506 }
 0x2ba   : > { %923 = vpow2.f32 %v496_v42  ;;  %405 = vrot.lane.b32.xlu1 %v922_v43, %s980_s29  ;;  %v403_v44 = vmul.f32 %v922_v43, %v920_v34 }
 0x2bd   : > { %v514_v50 = vpop.permute.xlu1 %513 }
 0x2be   : > { %537 = vperm.xlu1 %901, %v403_v44   ;;  %v516_v60 = vmul.f32 %v514_v50, %v503_v58 }
 0x2c2   : > { %902 = vset.pattern.permute.xlu1 %v984_v45  ;;  %v785_v45 = vpack.c.bf16 %v1077_v10, %v1088_v17 }
 0x2c4   : > { %v924_v46 = vpop.eup %923  ;;  %786 = vmatpush3.bf16.msra.mxu1 %v785_v45 }
 0x2c5   : > { %v498_v47 = vsel %vm1164_vm7, %v924_v46, 0.0 }
 0x2c6   : > { %499 = vadd.xlane.f32.xlu0 %v498_v47 }
 0x2dc   : > { %409 = vrot.lane.b32.xlu0 %v922_v43, %s981_s30 }
 0x32c   : > { %v406_v51 = vpop.permute.xlu1 %405 }
 0x32d   : > { %v408_v52 = vmul.f32 %v916_v26, %v406_v51 }
 0x32f   : > { %543 = vperm.xlu1 %902, %v408_v52  }
 0x333   : > { %903 = vset.pattern.permute.xlu1 %v986_v53 }
 0x33d   : > { %v538_v0 = vpop.permute.xlu1 %537 }
 0x353   : > { %v500_v54 = vpop.xlane.xlu0 %499 }
 0x354   : > { %925 = vrcp.f32 %v500_v54 }
 0x357   : > { %v410_v55 = vpop.permute.xlu0 %409 }
 0x358   : > { %v412_v56 = vmul.f32 %v918_v28, %v410_v55 }
 0x35a   : > { %550 = vperm.xlu1 %903, %v412_v56  }
 0x35e   : > { %v926_v57 = vpop.eup %925 }
 0x35f   : > { %v502_v59 = vmul.f32 %v926_v57, %v924_v46 }
 0x361   : > { %v509_v61 = vmul.f32 %v507_v49, %v502_v59 }
 0x363   : > { %v517_v62 = vadd.f32 %v516_v60, %v509_v61 }
 0x365   : > { %527 = vrot.lane.b32.xlu0 %v517_v62, %s977_s27  ;;  %519 = vrot.lane.b32.xlu1 %v517_v62, %s987_s5 }
 0x369   : > { %558 = vperm.xlu0 %904, %v366_v63   ;;  %522 = vrot.lane.b32.xlu1 %v517_v62, %s980_s29 }
 0x36d   : > { %530 = vrot.lane.b32.xlu1 %v517_v62, %s988_s6 }
 0x3ae   : > { %v544_v1 = vpop.permute.xlu1 %543 }
 0x3af   : > { %v546_v7 = vmul.f32 %v544_v1, %v517_v62 }
 0x3d7   : > { %v528_v8 = vpop.permute.xlu0 %527 }
 0x3d9   : > { %v551_v2 = vpop.permute.xlu1 %550 }
 0x3dd   : > { %v520_v3 = vpop.permute.xlu1 %519 }
 0x3e1   : > { %v523_v4 = vpop.permute.xlu1 %522 }
 0x3e2   : > { %v526_v5 = vsel %vm525_vm8, %v520_v3, %v523_v4 }
 0x3e3   : > { %v540_v6 = vmul.f32 %v538_v0, %v526_v5 }
 0x3e5   : > { %v531_v9 = vpop.permute.xlu1 %530  ;;  %v547_v12 = vadd.f32 %v546_v7, %v540_v6 }
 0x3e6   : > { %v534_v11 = vsel %vm533_vm9, %v528_v8, %v531_v9 }
 0x3e7   : > { %v553_v36 = vmul.f32 %v551_v2, %v534_v11 }
 0x3e8   : > { %v559_v16 = vpop.permute.xlu0 %558 }
 0x3e9   : > { %v554_v13 = vadd.f32 %v553_v36, %v547_v12  ;;  %v791_v19 = vand.u32 2147483647, %v559_v16  ;;  %v796_v21 = vtrunc.f32 %v559_v16  ;;  %vm795_vm1 = vcmp.lt.f32.partialorder %v559_v16, 0 }
 0x3ea   : > { %v827_v26 = vsel %vm795_vm1, 0, %v989_v15  ;;  %v815_v29 = vsel %vm795_vm1, 2139095040, %v976_v35 }
 0x3eb   : > { %v555_v14 = vmax.f32 %v554_v13, 1e-30  ;;  %v800_v20 = vtrunc.f32 %v791_v19  ;;  %vm792_vm10 = vcmp.eq.f32.partialorder %v791_v19, 2139095040  ;;  %vm797_vm11 = vcmp.ne.f32.partialorder %v559_v16, %v796_v21 }
 0x3ec   : > { %vm798_vm12 = vmor %vm797_vm11, %vm792_vm10  ;;  %vm799_vm9 = vcmp.lt.f32.partialorder %v791_v19, 1266679808  ;;  %v828_v30 = vxor.u32 2147483648, %v827_v26 }
 0x3ed   : > { %v787_v18 = vand.u32 2147483647, %v555_v14  ;;  %v801_v22 = vcvt.f32.s32 %v800_v20  ;;  %vm1165_vm13 = vcmp.lt.f32.partialorder %v555_v14, 0  ;;  %vm804_vm0 = vmneg %vm798_vm12  ;;  %vm808_vm2 = vcmp.eq.f32.partialorder %v555_v14, 0 }
 0x3ee   : > { %vm813_vm4 = vmand %vm1165_vm13, %vm798_vm12  ;;  %vm810_vm11 = vcmp.lt.s32.totalorder %v555_v14, 0 }
 0x3ef   : > { %927 = vlog2.f32 %v787_v18  ;;  %v802_v25 = vand.u32 1, %v801_v22  ;;  %vm811_vm14 = vcmp.gt.f32.partialorder %v787_v18, 1065353216  ;;  %vm820_vm8 = vmand %vm795_vm1, %vm808_vm2  ;;  %vm812_vm13 = vcmp.eq.f32.partialorder %v787_v18, 2139095040 }
 0x3f0   : > { %vm821_vm5 = vmxor %vm795_vm1, %vm811_vm14  ;;  %vm824_vm14 = vcmp.eq.f32.partialorder %v555_v14, 3212836864  ;;  %vm793_vm1 = vcmp.eq.f32.partialorder %v559_v16, 0 }
 0x3f1   : > { %vm803_vm15 = vcmp.eq.s32.totalorder %v802_v25, 1  ;;  %vm822_vm3 = vmor %vm820_vm8, %vm821_vm5  ;;  %vm1166_vm5 = vcmp.lt.f32.partialorder %v555_v14, 0  ;;  %vm647_vm8 = vcmask 195584  }
 0x3f2   : > { %vm805_vm6 = vmand %vm803_vm15, %vm804_vm0  ;;  %v823_v32 = vsel %vm822_vm3, 2139095040, %v976_v35  ;;  %vm832_vm15 = vcmp.ne.f32.partialorder %v555_v14, %v555_v14  ;;  %vm809_vm0 = vcmp.eq.f32.partialorder %v555_v14, 1065353216 }
 0x3f3   : > { %vm806_vm7 = vmand %vm799_vm9, %vm805_vm6  ;;  %v825_v38 = vsel %vm824_vm14, 1065353216, %v823_v32  ;;  %vm794_vm6 = vcmp.eq.f32.partialorder %v559_v16, 1065353216  ;;  %vm1169_vm9 = vcmask 64512  }
 0x3f4   : > { %v829_v34 = vsel %vm806_vm7, %v828_v30, %v827_v26  ;;  %vm817_vm12 = vmand %vm810_vm11, %vm806_vm7  ;;  %vm1167_vm7 = vcmask 122880  }
 0x3f5   : > { %v830_v40 = vsel %vm1166_vm5, %v829_v34, %v827_v26  ;;  %vm836_vm3 = vmor %vm809_vm0, %vm793_vm1 }
 0x3f9   : > { %v928_v23 = vpop.eup %927 }
 0x3fa   : > { %v789_v24 = vmul.f32 %v928_v23, %v559_v16 }
 0x3fc   : > { %929 = vpow2.f32 %v789_v24 }
 0x406   : > { %v930_v27 = vpop.eup %929 }
 0x407   : > { %v814_v28 = vsel %vm813_vm4, 2143289344, %v930_v27  ;;  %vm833_vm4 = vcmp.ne.f32.partialorder %v559_v16, %v559_v16 }
 0x408   : > { %v816_v31 = vsel %vm808_vm2, %v815_v29, %v814_v28  ;;  %vm834_vm2 = vmor %vm832_vm15, %vm833_vm4 }
 0x409   : > { %v818_v33 = vxor.u32 2147483648, %v816_v31 }
 0x40b   : > { %v819_v37 = vsel %vm817_vm12, %v818_v33, %v816_v31 }
 0x40c   : > { %v826_v39 = vsel %vm792_vm10, %v825_v38, %v819_v37  ;;  %vm569_vm10 = vcmask 130048  }
 0x40d   : > { %v831_v41 = vsel %vm812_vm13, %v830_v40, %v826_v39  ;;  %vm1168_vm13 = vmmov %vm1167_vm7 }
 0x40e   : > { %v835_v42 = vsel %vm834_vm2, 2143289344, %v831_v41 }
 0x40f   : > { %v837_v35 = vsel %vm836_vm3, 1065353216, %v835_v42 }
 0x410   : > { %v838_v43 = vsel %vm794_vm6, %v555_v14, %v837_v35 }
 0x411   : > { %v562_v44 = vsel %vm1167_vm7, %v838_v43, 0.0 }
 0x412   : > { %563 = vadd.xlane.f32.xlu1 %v562_v44 }
 0x49f   : > { %v564_v46 = vpop.xlane.xlu1 %563 }
 0x4a0   : > { %v565_v47 = vadd.f32 1e-16, %v564_v46 }
 0x4a2   : > { %931 = vrcp.f32 %v565_v47 }
 0x4ac   : > { %v932_v48 = vpop.eup %931 }
 0x4ad   : > { %v567_v49 = vmul.f32 %v932_v48, %v838_v43 }
 0x4af   : > { %643 = vrot.lane.b32.xlu0 %v567_v49, %s990_s7  ;;  %568 = vst.msk [vmem:[#allocation2] sm:$0x1] %vm1168_vm13, %v567_v49  ;;  %776 = vmatmul.mubr.msk.f32.vlgmr.msra.gmra.mrb[0].mxu1 %vm569_vm10, %v567_v49 }
 0x521   : > { %v644_v50 = vpop.permute.xlu0 %643 }
 0x582   : > { %v639_v51 = vpop.f32.mrb[0].mxu1 }
 0x583   : > { %v646_v52 = vsel %vm1169_vm9, %v639_v51, %v644_v50  ;;  %v777_v53 = vpop.f32.mrb[1].mxu1 }
 0x584   : > { %v648_v10 = vsel %vm647_vm8, %v646_v52, 0.0 }
 0x585   : > { %649 = vst [vmem:[%s255_s10] sm:$0x1] %v648_v10 }
 0x586 PF: > { %s14_s19 = sadd.s32 1, %s971_s19   ;;  %s1170_s15 = smov %s963_s17 }
 0x587   : > { %p11_p8 = scmp.ge.s32.totalorder %s14_s19, 18   ;;  %s1171_s16 = smov %s967_s18 }
 0x588   : > { %s1172_s17 = smov %s1175_s20  ;;  %s1173_s18 = smov %s1179_s21 }
 0x589   :  { %13 = sbr.rel (!%p11_p8) target bundleno = 3 (0x3), region = 76 }

</bundles_post_ra>
